<compile_context>
chip_gen: v5e
topology: v5e:2x2
jax: 0.10.0
libtpu: 0.0.40
codegen_flags: <defaults>
</compile_context>

<pallas_src>
import functools

import jax
import jax.numpy as jnp
from jax.experimental import pallas as pl
from jax.experimental.pallas import tpu as pltpu

OUT_PAD = 128   # lane-dense padded output width (unmasked vst)


def _find_index_kernel(ids_ref, e_ih_ref, w_hh_t_ref, w_fused_ref, b_ref,
                       out_ref, xw_ref):
    """Fused gather + RNN recurrence + (avg-pool . linear) for one batch block.

    ids_ref    : (L*BB, 1)        int32  time-major token ids (row t*BB + b)
    e_ih_ref   : (Vpad, D)        f32    emb_table @ W_ih^T (padded rows)
    w_hh_t_ref : (D, D)           f32    W_hh^T
    w_fused_ref: (L*D, OUT_PAD)   f32    kron(W_lin^T, 1/D), zero-padded cols
    b_ref      : (1, OUT_PAD)     f32    bias, zero-padded
    out_ref    : (BB, OUT_PAD)    f32
    xw_ref     : (L*BB, D)        f32    scratch: time-major x_t @ W_ih^T
    """
    lbb = ids_ref.shape[0]
    vocab_pad, D = e_ih_ref.shape
    bb = out_ref.shape[0]
    L = lbb // bb

    # Fused embedding gather + input projection for ALL timesteps in one MXU
    # matmul: one-hot(ids) @ (emb_table @ W_ih^T), written time-major.
    vocab_iota = jax.lax.broadcasted_iota(jnp.int32, (lbb, vocab_pad), 1)
    onehot = (vocab_iota == ids_ref[...]).astype(jnp.float32)         # (L*BB,V)
    xw_ref[...] = jnp.dot(onehot, e_ih_ref[...],
                          preferred_element_type=jnp.float32)         # (L*BB,D)

    w_hh_t = w_hh_t_ref[...]
    bias = b_ref[...]                                                 # (1,OUT)

    # Step 0 (h_0 = 0); bias folded into the accumulator init.
    h = jnp.tanh(xw_ref[0:bb, :])                                     # (BB, D)
    acc = bias + jnp.dot(h, w_fused_ref[0:D, :],
                         preferred_element_type=jnp.float32)          # (BB,OUT)

    # Serial recurrence: h_t = tanh(x_t W_ih^T + h_{t-1} W_hh^T).
    # The accumulation matmul is independent of the next step's h @ W_hh^T,
    # so it issues off the critical dependence chain.
    for t in range(1, L):                                             # unrolled
        h = jnp.tanh(xw_ref[t * bb:(t + 1) * bb, :]
                     + jnp.dot(h, w_hh_t, preferred_element_type=jnp.float32))
        acc = acc + jnp.dot(h, w_fused_ref[t * D:(t + 1) * D, :],
                            preferred_element_type=jnp.float32)

    out_ref[...] = acc


def prepare_params(emb_table, w_ih, w_hh, w_lin, b_lin):
    """One-time parameter preparation (transposes / kron / padding hoisted)."""
    vocab, D = emb_table.shape
    n_out, L = w_lin.shape                     # (L+1, L)
    if n_out > OUT_PAD:
        raise ValueError("sentence_length + 1 must be <= 128")
    vocab_pad = ((vocab + 7) // 8) * 8

    e_ih = jnp.dot(emb_table.astype(jnp.float32),
                   w_ih.T.astype(jnp.float32))                        # (V, D)
    e_ih = jnp.pad(e_ih, ((0, vocab_pad - vocab), (0, 0)))

    # Fused AvgPool1d(D) + Linear:  pred = sum_t mean_d(h_t) * W_lin[:, t] + b
    w_fused = jnp.kron(w_lin.T.astype(jnp.float32),
                       jnp.ones((D, 1), jnp.float32)) / D             # (L*D,L+1)
    w_fused = jnp.pad(w_fused, ((0, 0), (0, OUT_PAD - n_out)))

    b_pad = jnp.pad(b_lin.astype(jnp.float32),
                    (0, OUT_PAD - n_out)).reshape(1, OUT_PAD)

    return dict(e_ih=e_ih,
                w_hh_t=w_hh.T.astype(jnp.float32),
                w_fused=w_fused,
                b_pad=b_pad,
                L=L, D=D, n_out=n_out)


def _block_rows(batch: int) -> int:
    """Rows per grid block: sublane-aligned, <=128, and >=2 blocks if possible
    (so the 'parallel' axis can shard across both TensorCores on v7x)."""
    b8 = ((max(int(batch), 1) + 7) // 8) * 8
    if b8 <= 8:
        return 8
    half = (((b8 // 2) + 7) // 8) * 8
    return int(max(8, min(half, 128)))


@functools.partial(jax.jit, static_argnames=("L", "D", "n_out"))
def find_index_forward(ids, e_ih, w_hh_t, w_fused, b_pad, *, L, D, n_out):
    """Equivalent of FindIndexModel.forward(x) (y=None branch)."""
    B = ids.shape[0]
    BB = _block_rows(B)
    n_blocks = pl.cdiv(B, BB)
    B_pad = n_blocks * BB
    vocab_pad = e_ih.shape[0]

    ids_p = jnp.pad(ids.astype(jnp.int32), ((0, B_pad - B), (0, 0)))
    # Time-major, block-contiguous ids column: row i*L*BB + t*BB + b holds
    # ids[i*BB + b, t].  Tiny int32 shuffle, done once in XLA.
    ids_col = (ids_p.reshape(n_blocks, BB, L)
                    .transpose(0, 2, 1)
                    .reshape(n_blocks * L * BB, 1))

    out = pl.pallas_call(
        _find_index_kernel,
        out_shape=jax.ShapeDtypeStruct((B_pad, OUT_PAD), jnp.float32),
        grid_spec=pltpu.PrefetchScalarGridSpec(
            num_scalar_prefetch=0,
            grid=(n_blocks,),
            in_specs=[
                pl.BlockSpec((L * BB, 1), lambda i: (i, 0)),          # ids
                pl.BlockSpec((vocab_pad, D), lambda i: (0, 0)),       # emb@Wih^T
                pl.BlockSpec((D, D), lambda i: (0, 0)),               # W_hh^T
                pl.BlockSpec((L * D, OUT_PAD), lambda i: (0, 0)),     # fused W
                pl.BlockSpec((1, OUT_PAD), lambda i: (0, 0)),         # bias
            ],
            out_specs=pl.BlockSpec((BB, OUT_PAD), lambda i: (i, 0)),
            scratch_shapes=[pltpu.VMEM((L * BB, D), jnp.float32)],
        ),
        compiler_params=pltpu.CompilerParams(
            dimension_semantics=("parallel",)),
    )(ids_col, e_ih, w_hh_t, w_fused, b_pad)

    return out[:B, :n_out]


if __name__ == "__main__":
    # Small shapes consistent with the module.
    VOCAB = 30            # len(vocab)
    DIM = 32              # dim_size
    SENT_LEN = 8          # sentence_length
    BATCH = 2

    key = jax.random.PRNGKey(0)
    k_emb, k_ih, k_hh, k_lw, k_lb, k_x, k_x2 = jax.random.split(key, 7)

    emb_table = jax.random.normal(k_emb, (VOCAB, DIM), jnp.float32) * 0.1
    emb_table = emb_table.at[0].set(0.0)              # padding_idx=0

    w_ih = jax.random.normal(k_ih, (DIM, DIM), jnp.float32) * 0.1   # weight_ih_l0
    w_hh = jax.random.normal(k_hh, (DIM, DIM), jnp.float32) * 0.1   # weight_hh_l0
    w_lin = jax.random.normal(k_lw, (SENT_LEN + 1, SENT_LEN), jnp.float32) * 0.1
    b_lin = jax.random.normal(k_lb, (SENT_LEN + 1,), jnp.float32) * 0.1

    params = prepare_params(emb_table, w_ih, w_hh, w_lin, b_lin)

    def run(xx):
        return find_index_forward(
            xx, params["e_ih"], params["w_hh_t"], params["w_fused"],
            params["b_pad"], L=params["L"], D=params["D"],
            n_out=params["n_out"])

    # Pure-JAX reference of the same math.
    def ref_forward(xx):
        xe = emb_table[xx].astype(jnp.float32)
        def step(h, xt):
            h = jnp.tanh(xt @ w_ih.T + h @ w_hh.T)
            return h, h
        h0 = jnp.zeros((xx.shape[0], DIM), jnp.float32)
        _, hs = jax.lax.scan(step, h0, jnp.swapaxes(xe, 0, 1))
        outs = jnp.swapaxes(hs, 0, 1)                 # (B, L, D)
        pooled = jnp.mean(outs, axis=-1)              # (B, L)
        return pooled @ w_lin.T + b_lin               # (B, L+1)

    x = jax.random.randint(k_x, (BATCH, SENT_LEN), 0, VOCAB, dtype=jnp.int32)
    pred = jax.block_until_ready(run(x))
    assert pred.shape == (BATCH, SENT_LEN + 1)
    assert jnp.allclose(pred, ref_forward(x), atol=1e-4, rtol=1e-4)

    # Multi-block path (BB > 8, >= 2 grid blocks -> dual-TC sharding on v7x).
    x2 = jax.random.randint(k_x2, (32, SENT_LEN), 0, VOCAB, dtype=jnp.int32)
    pred2 = jax.block_until_ready(run(x2))
    assert jnp.allclose(pred2, ref_forward(x2), atol=1e-4, rtol=1e-4)

    # TODO(synk): training-time cross_entropy branch (y is not None) not implemented.
    print("KERNEL_OK")
</pallas_src>

<mosaic_0001>
module attributes {stable_mosaic.version = 11 : i64} {
  func.func @_find_index_kernel(%arg0: i32, %arg1: memref<64x1xi32, #tpu.memory_space<vmem>>, %arg2: memref<32x32xf32, #tpu.memory_space<vmem>>, %arg3: memref<32x32xf32, #tpu.memory_space<vmem>>, %arg4: memref<256x128xf32, #tpu.memory_space<vmem>>, %arg5: memref<1x128xf32, #tpu.memory_space<vmem>>, %arg6: memref<8x128xf32, #tpu.memory_space<vmem>>, %arg7: memref<64x32xf32, #tpu.memory_space<vmem>>) attributes {dimension_semantics = [#tpu.dimension_semantics<parallel>], iteration_bounds = array<i64: 1>, scalar_prefetch = 0 : i64, scratch_operands = 1 : i64, tpu.core_type = #tpu.core_type<tc>, window_params = [{transform_indices = @transform_0, window_bounds = array<i64: 64, 1>}, {pipeline_mode = #tpu.pipeline_mode<synchronous>, transform_indices = @transform_1, window_bounds = array<i64: 32, 32>}, {pipeline_mode = #tpu.pipeline_mode<synchronous>, transform_indices = @transform_2, window_bounds = array<i64: 32, 32>}, {pipeline_mode = #tpu.pipeline_mode<synchronous>, transform_indices = @transform_3, window_bounds = array<i64: 256, 128>}, {pipeline_mode = #tpu.pipeline_mode<synchronous>, transform_indices = @transform_4, window_bounds = array<i64: 1, 128>}, {transform_indices = @transform_5, window_bounds = array<i64: 8, 128>}]} {
    %0 = tpu.iota {dimensions = array<i32: 1>} : vector<64x32xi32>
    %c0 = arith.constant 0 : index
    %c0_0 = arith.constant 0 : index
    %1 = vector.load %arg1[%c0, %c0_0] : memref<64x1xi32, #tpu.memory_space<vmem>>, vector<64x1xi32>
    %2 = vector.broadcast %1 : vector<64x1xi32> to vector<64x32xi32>
    %3 = arith.cmpi eq, %0, %2 : vector<64x32xi32>
    %4 = arith.extui %3 : vector<64x32xi1> to vector<64x32xi32>
    %5 = arith.sitofp %4 : vector<64x32xi32> to vector<64x32xf32>
    %c0_1 = arith.constant 0 : index
    %c0_2 = arith.constant 0 : index
    %6 = vector.load %arg2[%c0_1, %c0_2] : memref<32x32xf32, #tpu.memory_space<vmem>>, vector<32x32xf32>
    %cst = arith.constant dense<0.000000e+00> : vector<64x32xf32>
    %7 = tpu.matmul %5, %6, %cst {dimension_numbers = #tpu.dot_dimension_numbers<[1], [0], [0], [1], [0, 0, 1, 1], [], []>} : vector<64x32xf32>, vector<32x32xf32>, vector<64x32xf32> -> vector<64x32xf32>
    %c0_3 = arith.constant 0 : index
    %c0_4 = arith.constant 0 : index
    %8 = vector.load %arg7[%c0_3, %c0_4] : memref<64x32xf32, #tpu.memory_space<vmem>>, vector<64x32xf32>
    tpu.vector_store %arg7[%c0_3, %c0_4], %7 {strides = array<i32>} : memref<64x32xf32, #tpu.memory_space<vmem>>, vector<64x32xf32>,
    %c0_5 = arith.constant 0 : index
    %c0_6 = arith.constant 0 : index
    %9 = vector.load %arg3[%c0_5, %c0_6] : memref<32x32xf32, #tpu.memory_space<vmem>>, vector<32x32xf32>
    %c0_7 = arith.constant 0 : index
    %c0_8 = arith.constant 0 : index
    %10 = vector.load %arg5[%c0_7, %c0_8] : memref<1x128xf32, #tpu.memory_space<vmem>>, vector<1x128xf32>
    %c0_9 = arith.constant 0 : index
    %c0_10 = arith.constant 0 : index
    %11 = vector.load %arg7[%c0_9, %c0_10] : memref<64x32xf32, #tpu.memory_space<vmem>>, vector<8x32xf32>
    %12 = math.tanh %11 : vector<8x32xf32>
    %c0_11 = arith.constant 0 : index
    %c0_12 = arith.constant 0 : index
    %13 = vector.load %arg4[%c0_11, %c0_12] : memref<256x128xf32, #tpu.memory_space<vmem>>, vector<32x128xf32>
    %cst_13 = arith.constant dense<0.000000e+00> : vector<8x128xf32>
    %14 = tpu.matmul %12, %13, %cst_13 {dimension_numbers = #tpu.dot_dimension_numbers<[1], [0], [0], [1], [0, 0, 1, 1], [], []>} : vector<8x32xf32>, vector<32x128xf32>, vector<8x128xf32> -> vector<8x128xf32>
    %15 = vector.broadcast %10 : vector<1x128xf32> to vector<8x128xf32>
    %16 = arith.addf %15, %14 : vector<8x128xf32>
    %c8 = arith.constant 8 : index
    %c0_14 = arith.constant 0 : index
    %17 = vector.load %arg7[%c8, %c0_14] : memref<64x32xf32, #tpu.memory_space<vmem>>, vector<8x32xf32>
    %cst_15 = arith.constant dense<0.000000e+00> : vector<8x32xf32>
    %18 = tpu.matmul %12, %9, %cst_15 {dimension_numbers = #tpu.dot_dimension_numbers<[1], [0], [0], [1], [0, 0, 1, 1], [], []>} : vector<8x32xf32>, vector<32x32xf32>, vector<8x32xf32> -> vector<8x32xf32>
    %19 = arith.addf %17, %18 : vector<8x32xf32>
    %20 = math.tanh %19 : vector<8x32xf32>
    %c32 = arith.constant 32 : index
    %c0_16 = arith.constant 0 : index
    %21 = vector.load %arg4[%c32, %c0_16] : memref<256x128xf32, #tpu.memory_space<vmem>>, vector<32x128xf32>
    %cst_17 = arith.constant dense<0.000000e+00> : vector<8x128xf32>
    %22 = tpu.matmul %20, %21, %cst_17 {dimension_numbers = #tpu.dot_dimension_numbers<[1], [0], [0], [1], [0, 0, 1, 1], [], []>} : vector<8x32xf32>, vector<32x128xf32>, vector<8x128xf32> -> vector<8x128xf32>
    %23 = arith.addf %16, %22 : vector<8x128xf32>
    %c16 = arith.constant 16 : index
    %c0_18 = arith.constant 0 : index
    %24 = vector.load %arg7[%c16, %c0_18] : memref<64x32xf32, #tpu.memory_space<vmem>>, vector<8x32xf32>
    %cst_19 = arith.constant dense<0.000000e+00> : vector<8x32xf32>
    %25 = tpu.matmul %20, %9, %cst_19 {dimension_numbers = #tpu.dot_dimension_numbers<[1], [0], [0], [1], [0, 0, 1, 1], [], []>} : vector<8x32xf32>, vector<32x32xf32>, vector<8x32xf32> -> vector<8x32xf32>
    %26 = arith.addf %24, %25 : vector<8x32xf32>
    %27 = math.tanh %26 : vector<8x32xf32>
    %c64 = arith.constant 64 : index
    %c0_20 = arith.constant 0 : index
    %28 = vector.load %arg4[%c64, %c0_20] : memref<256x128xf32, #tpu.memory_space<vmem>>, vector<32x128xf32>
    %cst_21 = arith.constant dense<0.000000e+00> : vector<8x128xf32>
    %29 = tpu.matmul %27, %28, %cst_21 {dimension_numbers = #tpu.dot_dimension_numbers<[1], [0], [0], [1], [0, 0, 1, 1], [], []>} : vector<8x32xf32>, vector<32x128xf32>, vector<8x128xf32> -> vector<8x128xf32>
    %30 = arith.addf %23, %29 : vector<8x128xf32>
    %c24 = arith.constant 24 : index
    %c0_22 = arith.constant 0 : index
    %31 = vector.load %arg7[%c24, %c0_22] : memref<64x32xf32, #tpu.memory_space<vmem>>, vector<8x32xf32>
    %cst_23 = arith.constant dense<0.000000e+00> : vector<8x32xf32>
    %32 = tpu.matmul %27, %9, %cst_23 {dimension_numbers = #tpu.dot_dimension_numbers<[1], [0], [0], [1], [0, 0, 1, 1], [], []>} : vector<8x32xf32>, vector<32x32xf32>, vector<8x32xf32> -> vector<8x32xf32>
    %33 = arith.addf %31, %32 : vector<8x32xf32>
    %34 = math.tanh %33 : vector<8x32xf32>
    %c96 = arith.constant 96 : index
    %c0_24 = arith.constant 0 : index
    %35 = vector.load %arg4[%c96, %c0_24] : memref<256x128xf32, #tpu.memory_space<vmem>>, vector<32x128xf32>
    %cst_25 = arith.constant dense<0.000000e+00> : vector<8x128xf32>
    %36 = tpu.matmul %34, %35, %cst_25 {dimension_numbers = #tpu.dot_dimension_numbers<[1], [0], [0], [1], [0, 0, 1, 1], [], []>} : vector<8x32xf32>, vector<32x128xf32>, vector<8x128xf32> -> vector<8x128xf32>
    %37 = arith.addf %30, %36 : vector<8x128xf32>
    %c32_26 = arith.constant 32 : index
    %c0_27 = arith.constant 0 : index
    %38 = vector.load %arg7[%c32_26, %c0_27] : memref<64x32xf32, #tpu.memory_space<vmem>>, vector<8x32xf32>
    %cst_28 = arith.constant dense<0.000000e+00> : vector<8x32xf32>
    %39 = tpu.matmul %34, %9, %cst_28 {dimension_numbers = #tpu.dot_dimension_numbers<[1], [0], [0], [1], [0, 0, 1, 1], [], []>} : vector<8x32xf32>, vector<32x32xf32>, vector<8x32xf32> -> vector<8x32xf32>
    %40 = arith.addf %38, %39 : vector<8x32xf32>
    %41 = math.tanh %40 : vector<8x32xf32>
    %c128 = arith.constant 128 : index
    %c0_29 = arith.constant 0 : index
    %42 = vector.load %arg4[%c128, %c0_29] : memref<256x128xf32, #tpu.memory_space<vmem>>, vector<32x128xf32>
    %cst_30 = arith.constant dense<0.000000e+00> : vector<8x128xf32>
    %43 = tpu.matmul %41, %42, %cst_30 {dimension_numbers = #tpu.dot_dimension_numbers<[1], [0], [0], [1], [0, 0, 1, 1], [], []>} : vector<8x32xf32>, vector<32x128xf32>, vector<8x128xf32> -> vector<8x128xf32>
    %44 = arith.addf %37, %43 : vector<8x128xf32>
    %c40 = arith.constant 40 : index
    %c0_31 = arith.constant 0 : index
    %45 = vector.load %arg7[%c40, %c0_31] : memref<64x32xf32, #tpu.memory_space<vmem>>, vector<8x32xf32>
    %cst_32 = arith.constant dense<0.000000e+00> : vector<8x32xf32>
    %46 = tpu.matmul %41, %9, %cst_32 {dimension_numbers = #tpu.dot_dimension_numbers<[1], [0], [0], [1], [0, 0, 1, 1], [], []>} : vector<8x32xf32>, vector<32x32xf32>, vector<8x32xf32> -> vector<8x32xf32>
    %47 = arith.addf %45, %46 : vector<8x32xf32>
    %48 = math.tanh %47 : vector<8x32xf32>
    %c160 = arith.constant 160 : index
    %c0_33 = arith.constant 0 : index
    %49 = vector.load %arg4[%c160, %c0_33] : memref<256x128xf32, #tpu.memory_space<vmem>>, vector<32x128xf32>
    %cst_34 = arith.constant dense<0.000000e+00> : vector<8x128xf32>
    %50 = tpu.matmul %48, %49, %cst_34 {dimension_numbers = #tpu.dot_dimension_numbers<[1], [0], [0], [1], [0, 0, 1, 1], [], []>} : vector<8x32xf32>, vector<32x128xf32>, vector<8x128xf32> -> vector<8x128xf32>
    %51 = arith.addf %44, %50 : vector<8x128xf32>
    %c48 = arith.constant 48 : index
    %c0_35 = arith.constant 0 : index
    %52 = vector.load %arg7[%c48, %c0_35] : memref<64x32xf32, #tpu.memory_space<vmem>>, vector<8x32xf32>
    %cst_36 = arith.constant dense<0.000000e+00> : vector<8x32xf32>
    %53 = tpu.matmul %48, %9, %cst_36 {dimension_numbers = #tpu.dot_dimension_numbers<[1], [0], [0], [1], [0, 0, 1, 1], [], []>} : vector<8x32xf32>, vector<32x32xf32>, vector<8x32xf32> -> vector<8x32xf32>
    %54 = arith.addf %52, %53 : vector<8x32xf32>
    %55 = math.tanh %54 : vector<8x32xf32>
    %c192 = arith.constant 192 : index
    %c0_37 = arith.constant 0 : index
    %56 = vector.load %arg4[%c192, %c0_37] : memref<256x128xf32, #tpu.memory_space<vmem>>, vector<32x128xf32>
    %cst_38 = arith.constant dense<0.000000e+00> : vector<8x128xf32>
    %57 = tpu.matmul %55, %56, %cst_38 {dimension_numbers = #tpu.dot_dimension_numbers<[1], [0], [0], [1], [0, 0, 1, 1], [], []>} : vector<8x32xf32>, vector<32x128xf32>, vector<8x128xf32> -> vector<8x128xf32>
    %58 = arith.addf %51, %57 : vector<8x128xf32>
    %c56 = arith.constant 56 : index
    %c0_39 = arith.constant 0 : index
    %59 = vector.load %arg7[%c56, %c0_39] : memref<64x32xf32, #tpu.memory_space<vmem>>, vector<8x32xf32>
    %cst_40 = arith.constant dense<0.000000e+00> : vector<8x32xf32>
    %60 = tpu.matmul %55, %9, %cst_40 {dimension_numbers = #tpu.dot_dimension_numbers<[1], [0], [0], [1], [0, 0, 1, 1], [], []>} : vector<8x32xf32>, vector<32x32xf32>, vector<8x32xf32> -> vector<8x32xf32>
    %61 = arith.addf %59, %60 : vector<8x32xf32>
    %62 = math.tanh %61 : vector<8x32xf32>
    %c224 = arith.constant 224 : index
    %c0_41 = arith.constant 0 : index
    %63 = vector.load %arg4[%c224, %c0_41] : memref<256x128xf32, #tpu.memory_space<vmem>>, vector<32x128xf32>
    %cst_42 = arith.constant dense<0.000000e+00> : vector<8x128xf32>
    %64 = tpu.matmul %62, %63, %cst_42 {dimension_numbers = #tpu.dot_dimension_numbers<[1], [0], [0], [1], [0, 0, 1, 1], [], []>} : vector<8x32xf32>, vector<32x128xf32>, vector<8x128xf32> -> vector<8x128xf32>
    %65 = arith.addf %58, %64 : vector<8x128xf32>
    %c0_43 = arith.constant 0 : index
    %c0_44 = arith.constant 0 : index
    %66 = vector.load %arg6[%c0_43, %c0_44] : memref<8x128xf32, #tpu.memory_space<vmem>>, vector<8x128xf32>
    tpu.vector_store %arg6[%c0_43, %c0_44], %65 {strides = array<i32>} : memref<8x128xf32, #tpu.memory_space<vmem>>, vector<8x128xf32>,
    return
  }
  func.func @transform_0(%arg0: i32) -> (i32, i32) {
    %c0_i32 = arith.constant 0 : i32
    %c0_i32_0 = arith.constant 0 : i32
    return %arg0, %c0_i32 : i32, i32
  }
  func.func @transform_1(%arg0: i32) -> (i32, i32) {
    %c0_i32 = arith.constant 0 : i32
    %c0_i32_0 = arith.constant 0 : i32
    %c0_i32_1 = arith.constant 0 : i32
    return %c0_i32, %c0_i32_0 : i32, i32
  }
  func.func @transform_2(%arg0: i32) -> (i32, i32) {
    %c0_i32 = arith.constant 0 : i32
    %c0_i32_0 = arith.constant 0 : i32
    %c0_i32_1 = arith.constant 0 : i32
    return %c0_i32, %c0_i32_0 : i32, i32
  }
  func.func @transform_3(%arg0: i32) -> (i32, i32) {
    %c0_i32 = arith.constant 0 : i32
    %c0_i32_0 = arith.constant 0 : i32
    %c0_i32_1 = arith.constant 0 : i32
    return %c0_i32, %c0_i32_0 : i32, i32
  }
  func.func @transform_4(%arg0: i32) -> (i32, i32) {
    %c0_i32 = arith.constant 0 : i32
    %c0_i32_0 = arith.constant 0 : i32
    %c0_i32_1 = arith.constant 0 : i32
    return %c0_i32, %c0_i32_0 : i32, i32
  }
  func.func @transform_5(%arg0: i32) -> (i32, i32) {
    %c0_i32 = arith.constant 0 : i32
    %c0_i32_0 = arith.constant 0 : i32
    return %arg0, %c0_i32 : i32, i32
  }
}

</mosaic_0001>

<bundles_post_ra>
// kernel: find_index_forward.1
= control target key start
LH: loop header
LB: loop body
LE: loop exit
PB: predicated region body
PF: predicated region fallthrough
CT: control target
= control target key end

     0   :  { %10 = vsyncpa [#allocation4], 0  ;;  %s663_s21 = smov [#allocation3]   ;;  %s664_s23 = smov 128   ;;  %s828_s0 = inlined_call_operand.vmem [shape: s32[64,1], index: 0, kind: input, shape index: {}]   ;;  %s829_s1 = inlined_call_operand.vmem [shape: f32[32,32], index: 1, kind: input, shape index: {}]   ;;  %s830_s2 = inlined_call_operand.vmem [shape: f32[32,32], index: 2, kind: input, shape index: {}]   ;;  %s831_s3 = inlined_call_operand.hbm [shape: f32[256,128], index: 3, kind: input, shape index: {}]   ;;  %s832_s4 = inlined_call_operand.vmem [shape: f32[1,128], index: 4, kind: input, shape index: {}]   ;;  %s833_s5 = inlined_call_operand.vmem [shape: f32[8,128], index: 5, kind: output, shape index: {}]  }
   0x1   :  { %s21_s20 = sshll.u32 %s831_s3, 4  ;;  %s23_s22 = sshll.u32 %s663_s21, 4  ;;  %s22_s20 = int_to_ptr.hbm [resolvable:$true] %s21_s20  ;;  %s24_s22 = int_to_ptr.vmem [resolvable:$true] %s23_s22 }
   0x2   :  { %s665_s24 = smov 8  }
   0x3   :  { %29 = dma.hbm_to_vmem [thread:$0]  %s22_s20, 4096, %s24_s22, [#allocation4], %s664_s23, %s664_s23, %s665_s24  }
   0x4   :  { %661 = dma.done.wait [#allocation4], 4096  }
   0x5   :  { %662 = vsyncadd [#allocation4], 4294963200  ;;  %v666_v0 = vmov 0   ;;  %v38_v1 = vld [vmem:[%s828_s0] sm:$0xff]  ;;  %v39_v2 = vld [vmem:[%s828_s0 + $0x8] sm:$0xff]  ;;  %v36_v13 = vlaneseq  ;;  %vm98_vm0 = vcmask 261120  }
   0x6   :  { %617 = vset.pattern.permute.xlu0 %v666_v0  ;;  %618 = vset.pattern.permute.xlu1 %v666_v0  ;;  %v40_v3 = vld [vmem:[%s828_s0 + $0x10] sm:$0xff]  ;;  %v97_v4 = vld [vmem:[%s829_s1 + $0x18] sm:$0xff]  ;;  %v95_v6 = vld [vmem:[%s829_s1 + $0x8] sm:$0xff]  ;;  %v667_v16 = vmov 0.0  }
   0x7   :  { %619 = vset.pattern.permute.xlu2 %v666_v0  ;;  %47 = vperm.xlu0 %617, %v38_v1   ;;  %v96_v5 = vld [vmem:[%s829_s1 + $0x10] sm:$0xff]  ;;  %v45_v7 = vld [vmem:[%s828_s0 + $0x38] sm:$0xff]  ;;  %v42_v9 = vld [vmem:[%s828_s0 + $0x20] sm:$0xff]  ;;  %v37_v14 = vand.u32 127, %v36_v13 }
   0x8   :  { %50 = vperm.xlu1 %618, %v39_v2   ;;  %53 = vperm.xlu2 %619, %v40_v3   ;;  %v41_v8 = vld [vmem:[%s828_s0 + $0x18] sm:$0xff]  ;;  %v94_v10 = vld [vmem:[%s829_s1] sm:$0xff]  ;;  %v44_v11 = vld [vmem:[%s828_s0 + $0x30] sm:$0xff] }
   0x9   :  { %135 = vmatpush.msra.mxu0 %v97_v4  ;;  %605 = vmatpush.msra.mxu2 %v97_v4  ;;  %v43_v12 = vld [vmem:[%s828_s0 + $0x28] sm:$0xff]  ;;  %v747_v30 = vld [vmem:[%s830_s2 + $0x18] sm:$0xff]  ;;  %v753_v32 = vld [vmem:[%s830_s2 + $0x10] sm:$0xff] }
   0xa   :  { %604 = vmatpush.msra.mxu1 %v97_v4  ;;  %v182_v31 = vld [vmem:[#allocation3 + $0x18] sm:$0xff]  ;;  %v181_v33 = vld [vmem:[#allocation3 + $0x10] sm:$0xff]  ;;  %v758_v34 = vld [vmem:[%s830_s2 + $0x8] sm:$0xff] }
   0xb   :  { %136 = vmatpush.msra.mxu0 %v96_v5  ;;  %607 = vmatpush.msra.mxu2 %v96_v5  ;;  %v180_v35 = vld [vmem:[#allocation3 + $0x8] sm:$0xff]  ;;  %v766_v38 = vld [vmem:[%s830_s2] sm:$0xff]  ;;  %v236_v50 = vld [vmem:[#allocation3 + $0x38] sm:$0xff] }
   0xc   :  { %606 = vmatpush.msra.mxu1 %v96_v5  ;;  %v179_v39 = vld [vmem:[#allocation3] sm:$0xff]  ;;  %252 = vmatpush.msra.mxu3 %v236_v50  ;;  %v235_v51 = vld [vmem:[#allocation3 + $0x30] sm:$0xff]  ;;  %v234_v52 = vld [vmem:[#allocation3 + $0x28] sm:$0xff] }
   0xd   :  { %137 = vmatpush.msra.mxu0 %v95_v6  ;;  %609 = vmatpush.msra.mxu2 %v95_v6  ;;  %v233_v53 = vld [vmem:[#allocation3 + $0x20] sm:$0xff]  ;;  %v287_v58 = vld [vmem:[#allocation3 + $0x58] sm:$0xff]  ;;  %v286_v59 = vld [vmem:[#allocation3 + $0x50] sm:$0xff] }
   0xe   :  { %608 = vmatpush.msra.mxu1 %v95_v6  ;;  %253 = vmatpush.msra.mxu3 %v235_v51  ;;  %v285_v60 = vld [vmem:[#allocation3 + $0x48] sm:$0xff]  ;;  %v284_v61 = vld [vmem:[#allocation3 + $0x40] sm:$0xff]  ;;  %v338_v3 = vld [vmem:[#allocation3 + $0x78] sm:$0xff] }
   0xf   :  { %68 = vperm.xlu0 %617, %v45_v7   ;;  %138 = vmatpush.msra.mxu0 %v94_v10  ;;  %v337_v4 = vld [vmem:[#allocation3 + $0x70] sm:$0xff]  ;;  %v336_v5 = vld [vmem:[#allocation3 + $0x68] sm:$0xff]  ;;  %v335_v6 = vld [vmem:[#allocation3 + $0x60] sm:$0xff] }
  0x10   :  { %56 = vperm.xlu2 %619, %v41_v8   ;;  %611 = vmatpush.msra.mxu2 %v94_v10  ;;  %v388_v13 = vld [vmem:[#allocation3 + $0x90] sm:$0xff] }
  0x11   :  { %610 = vmatpush.msra.mxu1 %v94_v10  ;;  %65 = vperm.xlu1 %618, %v44_v11  }
  0x12   :  { %223 = vmatpush.msrb.mxu2 %v747_v30  ;;  %254 = vmatpush.msra.mxu3 %v234_v52 }
  0x13   :  { %198 = vmatpush.msrb.mxu1 %v182_v31  ;;  %v491_v31 = vld [vmem:[#allocation3 + $0xd8] sm:$0xff] }
  0x14   :  { %224 = vmatpush.msrb.mxu2 %v753_v32  ;;  %255 = vmatpush.msra.mxu3 %v233_v53 }
  0x15   :  { %199 = vmatpush.msrb.mxu1 %v181_v33  ;;  %v490_v33 = vld [vmem:[#allocation3 + $0xd0] sm:$0xff] }
  0x16   :  { %225 = vmatpush.msrb.mxu2 %v758_v34  ;;  %325 = vmatpush.msrb.mxu3 %v747_v30 }
  0x17   :  { %59 = vperm.xlu0 %617, %v42_v9   ;;  %200 = vmatpush.msrb.mxu1 %v180_v35 }
  0x18   :  { %226 = vmatpush.msrb.mxu2 %v766_v38  ;;  %326 = vmatpush.msrb.mxu3 %v753_v32 }
  0x19   :  { %62 = vperm.xlu1 %618, %v43_v12   ;;  %201 = vmatpush.msrb.mxu1 %v179_v39  ;;  %v389_v12 = vld [vmem:[#allocation3 + $0x98] sm:$0xff] }
  0x1a   :  { %327 = vmatpush.msrb.mxu3 %v758_v34  ;;  %v542_v39 = vld [vmem:[#allocation3 + $0xf8] sm:$0xff] }
  0x1c   :  { %328 = vmatpush.msrb.mxu3 %v766_v38 }
  0x62   :  { %v54_v21 = vpop.permute.xlu2 %53 }
  0x63   :  { %vm72_vm4 = vcmp.eq.s32.totalorder %v37_v14, %v54_v21  ;;  %v440_v21 = vld [vmem:[#allocation3 + $0xb8] sm:$0xff] }
  0x64   :  { %v575_v23 = vsel %vm72_vm4, 1.0, %v667_v16 }
  0x6a   :  { %v57_v24 = vpop.permute.xlu2 %56 }
  0x6b   :  { %vm73_vm5 = vcmp.eq.s32.totalorder %v37_v14, %v57_v24  ;;  %v437_v24 = vld [vmem:[#allocation3 + $0xa0] sm:$0xff] }
  0x6c   :  { %v576_v25 = vsel %vm73_vm5, 1.0, %v667_v16 }
  0x79   :  { %v48_v15 = vpop.permute.xlu0 %47 }
  0x7a   :  { %vm70_vm1 = vcmp.eq.s32.totalorder %v37_v14, %v48_v15  ;;  %v51_v18 = vpop.permute.xlu1 %50  ;;  %v386_v15 = vld [vmem:[#allocation3 + $0x80] sm:$0xff] }
  0x7b   :  { %v573_v17 = vsel %vm70_vm1, 1.0, %v667_v16  ;;  %vm71_vm2 = vcmp.eq.s32.totalorder %v37_v14, %v51_v18 }
  0x7c   :  { %581 = vmatmul.msk.f32.vlgmr.msra.gmra.mxu0 %vm98_vm0, %v573_v17  ;;  %v574_v19 = vsel %vm71_vm2, 1.0, %v667_v16 }
  0x81   :  { %v69_v20 = vpop.permute.xlu0 %68 }
  0x82   :  { %vm77_vm3 = vcmp.eq.s32.totalorder %v37_v14, %v69_v20 }
  0x83   :  { %v580_v22 = vsel %vm77_vm3, 1.0, %v667_v16  ;;  %v66_v28 = vpop.permute.xlu1 %65 }
  0x84   :  { %582 = vmatmul.msk.f32.gmra.mxu0 %vm98_vm0, %v574_v19  ;;  %588 = vmatmul.msk.f32.vlgmr.msra.gmra.mxu2 %vm98_vm0, %v580_v22  ;;  %vm76_vm7 = vcmp.eq.s32.totalorder %v37_v14, %v66_v28  ;;  %v439_v22 = vld [vmem:[#allocation3 + $0xb0] sm:$0xff] }
  0x85   :  { %v579_v29 = vsel %vm76_vm7, 1.0, %v667_v16  ;;  %303 = vmatpush.msra.mxu2 %v287_v58 }
  0x86   :  { %587 = vmatmul.msk.f32.vlgmr.msra.gmra.mxu1 %vm98_vm0, %v579_v29 }
  0x87   :  { %274 = vmatpush.msra.mxu1 %v747_v30  ;;  %304 = vmatpush.msra.mxu2 %v286_v59 }
  0x89   :  { %v60_v26 = vpop.permute.xlu0 %59  ;;  %275 = vmatpush.msra.mxu1 %v753_v32  ;;  %305 = vmatpush.msra.mxu2 %v285_v60 }
  0x8a   :  { %vm74_vm6 = vcmp.eq.s32.totalorder %v37_v14, %v60_v26 }
  0x8b   :  { %v577_v27 = vsel %vm74_vm6, 1.0, %v667_v16  ;;  %v63_v36 = vpop.permute.xlu1 %62  ;;  %276 = vmatpush.msra.mxu1 %v758_v34  ;;  %306 = vmatpush.msra.mxu2 %v284_v61 }
  0x8c   :  { %583 = vmatmul.msk.f32.gmra.mxu0 %vm98_vm0, %v575_v23  ;;  %vm75_vm8 = vcmp.eq.s32.totalorder %v37_v14, %v63_v36  ;;  %v387_v14 = vld [vmem:[#allocation3 + $0x88] sm:$0xff] }
  0x8d   :  { %v578_v37 = vsel %vm75_vm8, 1.0, %v667_v16  ;;  %277 = vmatpush.msra.mxu1 %v766_v38  ;;  %v438_v23 = vld [vmem:[#allocation3 + $0xa8] sm:$0xff] }
  0x94   :  { %584 = vmatmul.msk.f32.gmra.mxu0 %vm98_vm0, %v576_v25 }
  0x9c   :  { %585 = vmatmul.msk.f32.gmra.mxu0 %vm98_vm0, %v577_v27 }
  0xa4   :  { %586 = vmatmul.msk.f32.gmra.mxu0 %vm98_vm0, %v578_v37 }
  0xf9   :  { %v140_v40 = vpop.f32.mrf.mxu0 }
  0xfa   :  { %164 = vst.msk [vmem:[#allocation2] sm:$0xff] %vm98_vm0, %v140_v40  ;;  %v541_v40 = vld [vmem:[#allocation3 + $0xf0] sm:$0xff] }
 0x101   :  { %v143_v41 = vpop.f32.mrf.mxu0  ;;  %v177_v42 = vld [vmem:[#allocation2] sm:$0xff] }
 0x102   :  { %165 = vst.msk [vmem:[#allocation2 + $0x8] sm:$0xff] %vm98_vm0, %v143_v41  ;;  %621 = vtanh.f32 %v177_v42  ;;  %v540_v41 = vld [vmem:[#allocation3 + $0xe8] sm:$0xff]  ;;  %v539_v42 = vld [vmem:[#allocation3 + $0xe0] sm:$0xff] }
 0x103   :  { %v158_v48 = vpop.f32.mrf.mxu1 }
 0x104   :  { %170 = vst.msk [vmem:[#allocation2 + $0x30] sm:$0xff] %vm98_vm0, %v158_v48  ;;  %v620_v48 = vld [vmem:[%s832_s4] ss:$0 sm:$0xff] }
 0x107   :  { %v161_v43 = vpop.f32.mrf.mxu2 }
 0x108   :  { %v622_v44 = vpop.eup %621  ;;  %171 = vst.msk [vmem:[#allocation2 + $0x38] sm:$0xff] %vm98_vm0, %v161_v43 }
 0x109   :  { %v146_v45 = vpop.f32.mrf.mxu0  ;;  %589 = vmatmul.msk.f32.vlgmr.msrb.gmra.mxu1 %vm98_vm0, %v622_v44  ;;  %590 = vmatmul.msk.f32.vlgmr.msrb.gmra.mxu2 %vm98_vm0, %v622_v44  ;;  %v210_v54 = vld [vmem:[#allocation2 + $0x8] sm:$0xff] }
 0x10a   :  { %166 = vst.msk [vmem:[#allocation2 + $0x10] sm:$0xff] %vm98_vm0, %v146_v45  ;;  %376 = vmatpush.msrb.mxu2 %v747_v30  ;;  %354 = vmatpush.msrb.mxu1 %v338_v3 }
 0x10b   :  { %v465_v35 = vld [vmem:[#allocation2 + $0x30] sm:$0xff] }
 0x10c   :  { %377 = vmatpush.msrb.mxu2 %v753_v32  ;;  %355 = vmatpush.msrb.mxu1 %v337_v4 }
 0x10e   :  { %378 = vmatpush.msrb.mxu2 %v758_v34  ;;  %356 = vmatpush.msrb.mxu1 %v336_v5 }
 0x10f   :  { %v516_v44 = vld [vmem:[#allocation2 + $0x38] sm:$0xff] }
 0x110   :  { %379 = vmatpush.msrb.mxu2 %v766_v38  ;;  %357 = vmatpush.msrb.mxu1 %v335_v6 }
 0x111   :  { %v149_v46 = vpop.f32.mrf.mxu0  ;;  %v261_v63 = vld [vmem:[#allocation2 + $0x10] sm:$0xff] }
 0x112   :  { %167 = vst.msk [vmem:[#allocation2 + $0x18] sm:$0xff] %vm98_vm0, %v149_v46 }
 0x119   :  { %v152_v47 = vpop.f32.mrf.mxu0  ;;  %v312_v8 = vld [vmem:[#allocation2 + $0x18] sm:$0xff] }
 0x11a   :  { %168 = vst.msk [vmem:[#allocation2 + $0x20] sm:$0xff] %vm98_vm0, %v152_v47 }
 0x121   :  { %v155_v49 = vpop.f32.mrf.mxu0  ;;  %v363_v17 = vld [vmem:[#allocation2 + $0x20] sm:$0xff] }
 0x122   :  { %169 = vst.msk [vmem:[#allocation2 + $0x28] sm:$0xff] %vm98_vm0, %v155_v49 }
 0x129   :  { %v414_v26 = vld [vmem:[#allocation2 + $0x28] sm:$0xff] }
 0x186   :  { %v793_v62 = vpop.f32.mrf.mxu1 }
 0x187   :  { %v209_v49 = vadd.f32 %v620_v48, %v793_v62 }
 0x18c   :  { %v228_v55 = vpop.f32.mrf.mxu2 }
 0x18d   :  { %v231_v56 = vadd.f32 %v228_v55, %v210_v54 }
 0x18f   :  { %623 = vtanh.f32 %v231_v56 }
 0x195   :  { %v624_v57 = vpop.eup %623 }
 0x196   :  { %591 = vmatmul.msk.f32.vlgmr.msra.gmra.mxu3 %vm98_vm0, %v624_v57  ;;  %592 = vmatmul.msk.f32.vlgmr.msra.gmra.mxu1 %vm98_vm0, %v624_v57 }
 0x197   :  { %427 = vmatpush.msra.mxu1 %v747_v30  ;;  %405 = vmatpush.msra.mxu3 %v389_v12 }
 0x199   :  { %428 = vmatpush.msra.mxu1 %v753_v32  ;;  %406 = vmatpush.msra.mxu3 %v388_v13 }
 0x19b   :  { %429 = vmatpush.msra.mxu1 %v758_v34  ;;  %407 = vmatpush.msra.mxu3 %v387_v14 }
 0x19d   :  { %430 = vmatpush.msra.mxu1 %v766_v38  ;;  %408 = vmatpush.msra.mxu3 %v386_v15 }
 0x213   :  { %v279_v0 = vpop.f32.mrf.mxu1 }
 0x214   :  { %v282_v1 = vadd.f32 %v279_v0, %v261_v63 }
 0x216   :  { %625 = vtanh.f32 %v282_v1 }
 0x219   :  { %v801_v7 = vpop.f32.mrf.mxu3 }
 0x21a   :  { %v260_v50 = vadd.f32 %v801_v7, %v209_v49 }
 0x21c   :  { %v626_v2 = vpop.eup %625 }
 0x21d   :  { %593 = vmatmul.msk.f32.vlgmr.msra.gmra.mxu2 %vm98_vm0, %v626_v2  ;;  %594 = vmatmul.msk.f32.vlgmr.msrb.gmra.mxu3 %vm98_vm0, %v626_v2 }
 0x21e   :  { %478 = vmatpush.msrb.mxu3 %v747_v30  ;;  %456 = vmatpush.msra.mxu2 %v440_v21 }
 0x220   :  { %479 = vmatpush.msrb.mxu3 %v753_v32  ;;  %457 = vmatpush.msra.mxu2 %v439_v22 }
 0x222   :  { %480 = vmatpush.msrb.mxu3 %v758_v34  ;;  %458 = vmatpush.msra.mxu2 %v438_v23 }
 0x224   :  { %481 = vmatpush.msrb.mxu3 %v766_v38  ;;  %459 = vmatpush.msra.mxu2 %v437_v24 }
 0x2a0   :  { %v330_v9 = vpop.f32.mrf.mxu3  ;;  %v308_v16 = vpop.f32.mrf.mxu2 }
 0x2a1   :  { %v333_v10 = vadd.f32 %v330_v9, %v312_v8  ;;  %v311_v51 = vadd.f32 %v308_v16, %v260_v50 }
 0x2a3   :  { %627 = vtanh.f32 %v333_v10 }
 0x2a9   :  { %v628_v11 = vpop.eup %627 }
 0x2aa   :  { %595 = vmatmul.msk.f32.vlgmr.msrb.gmra.mxu1 %vm98_vm0, %v628_v11  ;;  %596 = vmatmul.msk.f32.vlgmr.msrb.gmra.mxu2 %vm98_vm0, %v628_v11 }
 0x2ab   :  { %529 = vmatpush.msrb.mxu2 %v747_v30  ;;  %507 = vmatpush.msrb.mxu1 %v491_v31  ;;  %v489_v30 = vld [vmem:[#allocation3 + $0xc8] sm:$0xff] }
 0x2ad   :  { %530 = vmatpush.msrb.mxu2 %v753_v32  ;;  %508 = vmatpush.msrb.mxu1 %v490_v33  ;;  %v488_v32 = vld [vmem:[#allocation3 + $0xc0] sm:$0xff] }
 0x2af   :  { %531 = vmatpush.msrb.mxu2 %v758_v34  ;;  %509 = vmatpush.msrb.mxu1 %v489_v30 }
 0x2b1   :  { %532 = vmatpush.msrb.mxu2 %v766_v38  ;;  %510 = vmatpush.msrb.mxu1 %v488_v32 }
 0x327   :  { %v359_v25 = vpop.f32.mrf.mxu1 }
 0x328   :  { %v362_v52 = vadd.f32 %v359_v25, %v311_v51 }
 0x32d   :  { %v381_v18 = vpop.f32.mrf.mxu2 }
 0x32e   :  { %v384_v19 = vadd.f32 %v381_v18, %v363_v17 }
 0x330   :  { %629 = vtanh.f32 %v384_v19 }
 0x336   :  { %v630_v20 = vpop.eup %629 }
 0x337   :  { %597 = vmatmul.msk.f32.vlgmr.msra.gmra.mxu3 %vm98_vm0, %v630_v20  ;;  %598 = vmatmul.msk.f32.vlgmr.msra.gmra.mxu1 %vm98_vm0, %v630_v20 }
 0x338   :  { %558 = vmatpush.msra.mxu3 %v542_v39 }
 0x33a   :  { %559 = vmatpush.msra.mxu3 %v541_v40 }
 0x33c   :  { %560 = vmatpush.msra.mxu3 %v540_v41 }
 0x33e   :  { %561 = vmatpush.msra.mxu3 %v539_v42 }
 0x3b4   :  { %v432_v27 = vpop.f32.mrf.mxu1 }
 0x3b5   :  { %v435_v28 = vadd.f32 %v432_v27, %v414_v26 }
 0x3b7   :  { %631 = vtanh.f32 %v435_v28 }
 0x3ba   :  { %v410_v34 = vpop.f32.mrf.mxu3 }
 0x3bb   :  { %v413_v53 = vadd.f32 %v410_v34, %v362_v52 }
 0x3bd   :  { %v632_v29 = vpop.eup %631 }
 0x3be   :  { %599 = vmatmul.msk.f32.vlgmr.msra.gmra.mxu2 %vm98_vm0, %v632_v29  ;;  %600 = vmatmul.msk.f32.vlgmr.msrb.gmra.mxu3 %vm98_vm0, %v632_v29 }
 0x441   :  { %v483_v36 = vpop.f32.mrf.mxu3  ;;  %v461_v43 = vpop.f32.mrf.mxu2 }
 0x442   :  { %v486_v37 = vadd.f32 %v483_v36, %v465_v35  ;;  %v464_v55 = vadd.f32 %v461_v43, %v413_v53 }
 0x444   :  { %633 = vtanh.f32 %v486_v37 }
 0x44a   :  { %v634_v38 = vpop.eup %633 }
 0x44b   :  { %601 = vmatmul.msk.f32.vlgmr.msrb.gmra.mxu1 %vm98_vm0, %v634_v38  ;;  %602 = vmatmul.msk.f32.vlgmr.msrb.gmra.mxu2 %vm98_vm0, %v634_v38 }
 0x4c8   :  { %v512_v54 = vpop.f32.mrf.mxu1 }
 0x4c9   :  { %v515_v56 = vadd.f32 %v512_v54, %v464_v55 }
 0x4ce   :  { %v534_v45 = vpop.f32.mrf.mxu2 }
 0x4cf   :  { %v537_v46 = vadd.f32 %v534_v45, %v516_v44 }
 0x4d1   :  { %635 = vtanh.f32 %v537_v46 }
 0x4d7   :  { %v636_v47 = vpop.eup %635 }
 0x4d8   :  { %603 = vmatmul.msk.f32.vlgmr.msra.gmra.mxu3 %vm98_vm0, %v636_v47 }
 0x55b   :  { %v563_v57 = vpop.f32.mrf.mxu3 }
 0x55c   :  { %v566_v58 = vadd.f32 %v563_v57, %v515_v56 }
 0x55e   :  { %567 = vst [vmem:[%s833_s5] sm:$0xff] %v566_v58 }
 0x55f   :  { %572 = vsyncpa [#allocation4], 1 }

</bundles_post_ra>
